<compile_context>
chip_gen: v7x
topology: tpu7x:2x2x1
jax: 0.10.0
libtpu: 0.0.40
codegen_flags: <defaults>
</compile_context>

<pallas_src>
import functools

import jax
import jax.numpy as jnp
import numpy as np
from jax.experimental import pallas as pl
from jax.experimental.pallas import tpu as pltpu


# --------------------------------------------------------------------------- #
# Pallas kernel: ReLU -> (polyphase conv as one matmul) -> BatchNorm.          #
# --------------------------------------------------------------------------- #
def _relu_convT_bn_kernel(p_ref, v_ref, gb_ref, o_ref, *, n_phases, cout, eps):
    # ReLU.  Zero padding and duplicated im2col taps are unaffected
    # (relu(0)=0, elementwise), so applying it to the patch matrix is exact.
    patches = jnp.maximum(p_ref[...], 0.0)                      # (Ktot, M) f32

    # All s*s phases and all Cout channels in ONE MXU matmul, f32 accumulate.
    # Conv bias intentionally omitted: it cancels under training-mode BN.
    acc = jnp.dot(v_ref[...], patches,
                  preferred_element_type=jnp.float32)           # (n_phases*cout, M)
    m = acc.shape[1]
    acc = acc.reshape(n_phases, cout, m)                        # (phases, Cout, M)

    # BatchNorm2d, training mode: biased per-channel stats over phases x M
    # (= all N*OH*OW positions).  Two-pass, per-phase centered sum of squares:
    # keeps the live vreg set small (no (phases,Cout,M)-sized acc*acc temp)
    # and avoids E[X^2] - E[X]^2 cancellation.
    inv_cnt = 1.0 / float(n_phases * m)
    s1 = jnp.sum(jnp.sum(acc, axis=2, keepdims=True), axis=0, keepdims=True)
    mean = s1 * inv_cnt                                         # (1, Cout, 1)
    ssq = jnp.zeros((cout, 1), jnp.float32)
    for a in range(n_phases):                                   # static unroll (4)
        d = acc[a] - mean[0]                                    # (Cout, M)
        ssq = ssq + jnp.sum(d * d, axis=1, keepdims=True)       # (Cout, 1)
    var = ssq * inv_cnt                                         # (Cout, 1)

    gb = gb_ref[...]                                            # (2, Cout, 1)
    scale = jax.lax.rsqrt(var + eps) * gb[0]                    # (Cout, 1)
    shift = gb[1]                                               # (Cout, 1)
    o_ref[...] = ((acc - mean) * scale[None] + shift[None]).astype(o_ref.dtype)


# --------------------------------------------------------------------------- #
# Wrapper: polyphase geometry, im2col layout plumbing, pixel-shuffle back.     #
# --------------------------------------------------------------------------- #
def _phase_axis_geometry(ksize, stride, padding, in_size, q):
    """Polyphase geometry along one spatial axis of a transposed conv."""
    deltas = sorted({(a + padding - k) // stride
                     for a in range(stride) for k in range(ksize)
                     if (a + padding - k) % stride == 0})
    dmin, dmax = deltas[0], deltas[-1]
    pad_lo = max(0, -dmin)
    pad_hi = max(0, (q - 1 + dmax) - (in_size - 1))
    win = dmax - dmin + 1
    start = dmin + pad_lo          # window start offset inside the padded input
    return dmin, pad_lo, pad_hi, win, start


def _relu_convtranspose_bn_impl(x_nchw, w_t, bias, gamma, beta, *,
                                stride, padding, eps=1e-5):
    """x_nchw: (N, Cin, H, W); w_t: (Cin, Cout, KH, KW) (ConvTranspose2d layout)."""
    del bias  # cancels exactly under training-mode BatchNorm (see kernel note)

    N, Cin, H, W = x_nchw.shape
    _, Cout, KH, KW = w_t.shape
    s, p = int(stride), int(padding)
    OH = (H - 1) * s - 2 * p + KH
    OW = (W - 1) * s - 2 * p + KW
    assert OH > 0 and OW > 0
    assert OH % s == 0 and OW % s == 0, "polyphase path needs stride | OH, OW"
    Qh, Qw = OH // s, OW // s
    M = N * Qh * Qw

    dmin_h, pad_t, pad_b, WLh, rs = _phase_axis_geometry(KH, s, p, H, Qh)
    dmin_w, pad_l, pad_r, WLw, cs = _phase_axis_geometry(KW, s, p, W, Qw)
    Ktot = WLh * WLw * Cin

    # ---- combined polyphase weight V2[(a*s+b)*Cout+o, (uh*WLw+uw)*Cin+ci]:
    # built with ONE static gather (numpy index/mask computed at trace time)
    # instead of 16 traced dynamic-update-slices.
    v_idx = np.zeros((s * s * Cout, Ktot), np.int32)
    v_msk = np.zeros((s * s * Cout, Ktot), np.bool_)
    for a in range(s):
        for b_ in range(s):
            for o in range(Cout):
                r = (a * s + b_) * Cout + o
                for uh in range(WLh):
                    kh = a + p - s * (uh + dmin_h)
                    if not (0 <= kh < KH):
                        continue
                    for uw in range(WLw):
                        kw = b_ + p - s * (uw + dmin_w)
                        if not (0 <= kw < KW):
                            continue
                        for ci in range(Cin):
                            col = (uh * WLw + uw) * Cin + ci
                            v_idx[r, col] = ((ci * Cout + o) * KH + kh) * KW + kw
                            v_msk[r, col] = True
    w_flat = w_t.reshape(-1).astype(jnp.float32)
    V2 = jnp.where(v_msk, w_flat[v_idx], 0.0)                  # (s*s*Cout, Ktot)

    # ---- im2col patch matrix, lane-dense: (Ktot, M), M = N*Qh*Qw on lanes.
    # Pre-transpose the (small) input once so the stacked slabs reshape
    # directly — no 5-D transpose of the 9x-duplicated tensor.
    xt = jnp.transpose(x_nchw, (1, 0, 2, 3)).astype(jnp.float32)   # (Cin, N, H, W)
    xp = jnp.pad(xt, ((0, 0), (0, 0), (pad_t, pad_b), (pad_l, pad_r)))
    slabs = [xp[:, :, rs + uh:rs + uh + Qh, cs + uw:cs + uw + Qw]
             for uh in range(WLh) for uw in range(WLw)]
    P = jnp.stack(slabs, axis=0).reshape(Ktot, M)                  # (36, 512)

    # gamma/beta merged into a single (2, Cout, 1) input -> one DMA.
    gb = jnp.stack([gamma, beta]).astype(jnp.float32)[:, :, None]  # (2, Cout, 1)

    kernel = functools.partial(_relu_convT_bn_kernel,
                               n_phases=s * s, cout=Cout, eps=eps)

    out_k = pl.pallas_call(
        kernel,
        out_shape=jax.ShapeDtypeStruct((s * s, Cout, M), jnp.float32),
        grid=(1,),
        in_specs=[
            pl.BlockSpec((Ktot, M), lambda i: (0, 0)),
            pl.BlockSpec((s * s * Cout, Ktot), lambda i: (0, 0)),
            pl.BlockSpec((2, Cout, 1), lambda i: (0, 0, 0)),
        ],
        out_specs=pl.BlockSpec((s * s, Cout, M), lambda i: (0, 0, 0)),
        compiler_params=pltpu.CompilerParams(
            dimension_semantics=("arbitrary",),
            vmem_limit_bytes=16 * 1024 * 1024),
    )(P, V2, gb)

    # Pixel shuffle back to NCHW:
    # out_k[(a*s+b), o, n*Qh*Qw + qh*Qw + qw] -> y[n, o, qh*s + a, qw*s + b].
    out6 = out_k.reshape(s, s, Cout, N, Qh, Qw)
    y = jnp.transpose(out6, (3, 2, 4, 0, 5, 1)).reshape(N, Cout, OH, OW)
    return y


relu_convtranspose_bn = jax.jit(_relu_convtranspose_bn_impl,
                                static_argnames=("stride", "padding", "eps"))


# --------------------------------------------------------------------------- #
# Reference: direct scatter definition of ReLU -> ConvTranspose2d -> BN (NCHW) #
# --------------------------------------------------------------------------- #
def _reference(x, w_t, bias, gamma, beta, *, stride, padding, eps=1e-5):
    N, Cin, H, W = x.shape
    _, Cout, KH, KW = w_t.shape
    s, p = stride, padding
    OH = (H - 1) * s - 2 * p + KH
    OW = (W - 1) * s - 2 * p + KW
    xr = jnp.maximum(x, 0.0)
    contrib = jnp.einsum('nchw,cokl->nohwkl', xr, w_t)
    full = jnp.zeros((N, Cout, (H - 1) * s + KH, (W - 1) * s + KW), jnp.float32)
    for h in range(H):
        for ww in range(W):
            full = full.at[:, :, h * s:h * s + KH, ww * s:ww * s + KW].add(
                contrib[:, :, h, ww])
    y = full[:, :, p:p + OH, p:p + OW] + bias[None, :, None, None]
    mean = jnp.mean(y, axis=(0, 2, 3), keepdims=True)
    var = jnp.mean((y - mean) ** 2, axis=(0, 2, 3), keepdims=True)
    return ((y - mean) * jax.lax.rsqrt(var + eps) * gamma[None, :, None, None]
            + beta[None, :, None, None])


if __name__ == "__main__":
    # Module instantiation: ReLUConvTransposeBN(4, 8, kernel_size=4, padding=2, stride=1)
    # -> effective ConvTranspose2d(stride=2, padding=1) due to the positional arg swap.
    in_ch, out_ch, K = 4, 8, 4
    eff_stride, eff_pad = 2, 1

    key = jax.random.PRNGKey(0)
    kx, kw, kb, kg, kbe = jax.random.split(key, 5)
    x = jax.random.normal(kx, (2, in_ch, 16, 16), jnp.float32)
    w = 0.1 * jax.random.normal(kw, (in_ch, out_ch, K, K), jnp.float32)
    b = 0.1 * jax.random.normal(kb, (out_ch,), jnp.float32)
    gamma = 1.0 + 0.1 * jax.random.normal(kg, (out_ch,), jnp.float32)
    beta = 0.1 * jax.random.normal(kbe, (out_ch,), jnp.float32)

    out = relu_convtranspose_bn(x, w, b, gamma, beta,
                                stride=eff_stride, padding=eff_pad)
    out = jax.block_until_ready(out)

    ref = _reference(x, w, b, gamma, beta, stride=eff_stride, padding=eff_pad)
    np.testing.assert_allclose(np.asarray(out), np.asarray(ref),
                               rtol=2e-4, atol=2e-4)
    print("KERNEL_OK")
</pallas_src>

<mosaic_0001>
module attributes {stable_mosaic.version = 11 : i64} {
  func.func @_relu_convT_bn_kernel(%arg0: i32, %arg1: memref<36x512xf32, #tpu.memory_space<vmem>>, %arg2: memref<32x36xf32, #tpu.memory_space<vmem>>, %arg3: memref<2x8x1xf32, #tpu.memory_space<vmem>>, %arg4: memref<4x8x512xf32, #tpu.memory_space<vmem>>) attributes {dimension_semantics = [#tpu.dimension_semantics<arbitrary>], iteration_bounds = array<i64: 1>, scalar_prefetch = 0 : i64, scratch_operands = 0 : i64, tpu.core_type = #tpu.core_type<tc>, window_params = [{pipeline_mode = #tpu.pipeline_mode<synchronous>, transform_indices = @transform_0, window_bounds = array<i64: 36, 512>}, {pipeline_mode = #tpu.pipeline_mode<synchronous>, transform_indices = @transform_1, window_bounds = array<i64: 32, 36>}, {pipeline_mode = #tpu.pipeline_mode<synchronous>, transform_indices = @transform_2, window_bounds = array<i64: 2, 8, 1>}, {pipeline_mode = #tpu.pipeline_mode<synchronous>, transform_indices = @transform_3, window_bounds = array<i64: 4, 8, 512>}]} {
    %c0 = arith.constant 0 : index
    %c0_0 = arith.constant 0 : index
    %0 = vector.load %arg1[%c0, %c0_0] : memref<36x512xf32, #tpu.memory_space<vmem>>, vector<36x512xf32>
    %cst = arith.constant 0.000000e+00 : f32
    %1 = vector.broadcast %cst : f32 to vector<36x512xf32>
    %2 = arith.maximumf %0, %1 : vector<36x512xf32>
    %c0_1 = arith.constant 0 : index
    %c0_2 = arith.constant 0 : index
    %3 = vector.load %arg2[%c0_1, %c0_2] : memref<32x36xf32, #tpu.memory_space<vmem>>, vector<32x36xf32>
    %cst_3 = arith.constant dense<0.000000e+00> : vector<32x512xf32>
    %4 = tpu.matmul %3, %2, %cst_3 {dimension_numbers = #tpu.dot_dimension_numbers<[1], [0], [0], [1], [0, 0, 1, 1], [], []>} : vector<32x36xf32>, vector<36x512xf32>, vector<32x512xf32> -> vector<32x512xf32>
    %5 = vector.shape_cast %4 : vector<32x512xf32> to vector<4x8x512xf32>
    %cst_4 = arith.constant dense<0.000000e+00> : vector<4x8xf32>
    %6 = vector.multi_reduction <add>, %5, %cst_4 [2] : vector<4x8x512xf32> to vector<4x8xf32>
    %7 = vector.shape_cast %6 : vector<4x8xf32> to vector<4x8x1xf32>
    %cst_5 = arith.constant dense<0.000000e+00> : vector<8x1xf32>
    %8 = vector.multi_reduction <add>, %7, %cst_5 [0] : vector<4x8x1xf32> to vector<8x1xf32>
    %9 = vector.shape_cast %8 : vector<8x1xf32> to vector<1x8x1xf32>
    %cst_6 = arith.constant 4.8828125E-4 : f32
    %10 = vector.broadcast %cst_6 : f32 to vector<1x8x1xf32>
    %11 = arith.mulf %9, %10 : vector<1x8x1xf32>
    %cst_7 = arith.constant 0.000000e+00 : f32
    %12 = vector.broadcast %cst_7 : f32 to vector<8x1xf32>
    %13 = vector.extract_strided_slice %5 {offsets = [0, 0, 0], sizes = [1, 8, 512], strides = [1, 1, 1]} : vector<4x8x512xf32> to vector<1x8x512xf32>
    %14 = vector.shape_cast %13 : vector<1x8x512xf32> to vector<8x512xf32>
    %15 = vector.shape_cast %11 : vector<1x8x1xf32> to vector<8x1xf32>
    %16 = vector.broadcast %15 : vector<8x1xf32> to vector<8x512xf32>
    %17 = arith.subf %14, %16 : vector<8x512xf32>
    %18 = arith.mulf %17, %17 : vector<8x512xf32>
    %cst_8 = arith.constant dense<0.000000e+00> : vector<8xf32>
    %19 = vector.multi_reduction <add>, %18, %cst_8 [1] : vector<8x512xf32> to vector<8xf32>
    %20 = vector.shape_cast %19 : vector<8xf32> to vector<8x1xf32>
    %21 = arith.addf %12, %20 : vector<8x1xf32>
    %22 = vector.extract_strided_slice %5 {offsets = [1, 0, 0], sizes = [1, 8, 512], strides = [1, 1, 1]} : vector<4x8x512xf32> to vector<1x8x512xf32>
    %23 = vector.shape_cast %22 : vector<1x8x512xf32> to vector<8x512xf32>
    %24 = vector.shape_cast %11 : vector<1x8x1xf32> to vector<8x1xf32>
    %25 = vector.broadcast %24 : vector<8x1xf32> to vector<8x512xf32>
    %26 = arith.subf %23, %25 : vector<8x512xf32>
    %27 = arith.mulf %26, %26 : vector<8x512xf32>
    %cst_9 = arith.constant dense<0.000000e+00> : vector<8xf32>
    %28 = vector.multi_reduction <add>, %27, %cst_9 [1] : vector<8x512xf32> to vector<8xf32>
    %29 = vector.shape_cast %28 : vector<8xf32> to vector<8x1xf32>
    %30 = arith.addf %21, %29 : vector<8x1xf32>
    %31 = vector.extract_strided_slice %5 {offsets = [2, 0, 0], sizes = [1, 8, 512], strides = [1, 1, 1]} : vector<4x8x512xf32> to vector<1x8x512xf32>
    %32 = vector.shape_cast %31 : vector<1x8x512xf32> to vector<8x512xf32>
    %33 = vector.shape_cast %11 : vector<1x8x1xf32> to vector<8x1xf32>
    %34 = vector.broadcast %33 : vector<8x1xf32> to vector<8x512xf32>
    %35 = arith.subf %32, %34 : vector<8x512xf32>
    %36 = arith.mulf %35, %35 : vector<8x512xf32>
    %cst_10 = arith.constant dense<0.000000e+00> : vector<8xf32>
    %37 = vector.multi_reduction <add>, %36, %cst_10 [1] : vector<8x512xf32> to vector<8xf32>
    %38 = vector.shape_cast %37 : vector<8xf32> to vector<8x1xf32>
    %39 = arith.addf %30, %38 : vector<8x1xf32>
    %40 = vector.extract_strided_slice %5 {offsets = [3, 0, 0], sizes = [1, 8, 512], strides = [1, 1, 1]} : vector<4x8x512xf32> to vector<1x8x512xf32>
    %41 = vector.shape_cast %40 : vector<1x8x512xf32> to vector<8x512xf32>
    %42 = vector.shape_cast %11 : vector<1x8x1xf32> to vector<8x1xf32>
    %43 = vector.broadcast %42 : vector<8x1xf32> to vector<8x512xf32>
    %44 = arith.subf %41, %43 : vector<8x512xf32>
    %45 = arith.mulf %44, %44 : vector<8x512xf32>
    %cst_11 = arith.constant dense<0.000000e+00> : vector<8xf32>
    %46 = vector.multi_reduction <add>, %45, %cst_11 [1] : vector<8x512xf32> to vector<8xf32>
    %47 = vector.shape_cast %46 : vector<8xf32> to vector<8x1xf32>
    %48 = arith.addf %39, %47 : vector<8x1xf32>
    %cst_12 = arith.constant 4.8828125E-4 : f32
    %49 = vector.broadcast %cst_12 : f32 to vector<8x1xf32>
    %50 = arith.mulf %48, %49 : vector<8x1xf32>
    %c0_13 = arith.constant 0 : index
    %c0_14 = arith.constant 0 : index
    %c0_15 = arith.constant 0 : index
    %51 = vector.load %arg3[%c0_13, %c0_14, %c0_15] : memref<2x8x1xf32, #tpu.memory_space<vmem>>, vector<2x8x1xf32>
    %cst_16 = arith.constant 9.99999974E-6 : f32
    %52 = vector.broadcast %cst_16 : f32 to vector<8x1xf32>
    %53 = arith.addf %50, %52 : vector<8x1xf32>
    %54 = math.rsqrt %53 : vector<8x1xf32>
    %55 = vector.extract_strided_slice %51 {offsets = [0, 0, 0], sizes = [1, 8, 1], strides = [1, 1, 1]} : vector<2x8x1xf32> to vector<1x8x1xf32>
    %56 = vector.shape_cast %55 : vector<1x8x1xf32> to vector<8x1xf32>
    %57 = arith.mulf %54, %56 : vector<8x1xf32>
    %58 = vector.extract_strided_slice %51 {offsets = [1, 0, 0], sizes = [1, 8, 1], strides = [1, 1, 1]} : vector<2x8x1xf32> to vector<1x8x1xf32>
    %59 = vector.shape_cast %58 : vector<1x8x1xf32> to vector<8x1xf32>
    %60 = vector.broadcast %11 : vector<1x8x1xf32> to vector<4x8x512xf32>
    %61 = arith.subf %5, %60 : vector<4x8x512xf32>
    %62 = vector.shape_cast %57 : vector<8x1xf32> to vector<1x8x1xf32>
    %63 = vector.broadcast %62 : vector<1x8x1xf32> to vector<4x8x512xf32>
    %64 = arith.mulf %61, %63 : vector<4x8x512xf32>
    %65 = vector.shape_cast %59 : vector<8x1xf32> to vector<1x8x1xf32>
    %66 = vector.broadcast %65 : vector<1x8x1xf32> to vector<4x8x512xf32>
    %67 = arith.addf %64, %66 : vector<4x8x512xf32>
    %c0_17 = arith.constant 0 : index
    %c0_18 = arith.constant 0 : index
    %c0_19 = arith.constant 0 : index
    %68 = vector.load %arg4[%c0_17, %c0_18, %c0_19] : memref<4x8x512xf32, #tpu.memory_space<vmem>>, vector<4x8x512xf32>
    tpu.vector_store %arg4[%c0_17, %c0_18, %c0_19], %67 {strides = array<i32>} : memref<4x8x512xf32, #tpu.memory_space<vmem>>, vector<4x8x512xf32>,
    return
  }
  func.func @transform_0(%arg0: i32) -> (i32, i32) {
    %c0_i32 = arith.constant 0 : i32
    %c0_i32_0 = arith.constant 0 : i32
    %c0_i32_1 = arith.constant 0 : i32
    return %c0_i32, %c0_i32_0 : i32, i32
  }
  func.func @transform_1(%arg0: i32) -> (i32, i32) {
    %c0_i32 = arith.constant 0 : i32
    %c0_i32_0 = arith.constant 0 : i32
    %c0_i32_1 = arith.constant 0 : i32
    return %c0_i32, %c0_i32_0 : i32, i32
  }
  func.func @transform_2(%arg0: i32) -> (i32, i32, i32) {
    %c0_i32 = arith.constant 0 : i32
    %c0_i32_0 = arith.constant 0 : i32
    %c0_i32_1 = arith.constant 0 : i32
    %c0_i32_2 = arith.constant 0 : i32
    return %c0_i32, %c0_i32_0, %c0_i32_1 : i32, i32, i32
  }
  func.func @transform_3(%arg0: i32) -> (i32, i32, i32) {
    %c0_i32 = arith.constant 0 : i32
    %c0_i32_0 = arith.constant 0 : i32
    %c0_i32_1 = arith.constant 0 : i32
    %c0_i32_2 = arith.constant 0 : i32
    return %c0_i32, %c0_i32_0, %c0_i32_1 : i32, i32, i32
  }
}

</mosaic_0001>

<bundles_post_ra>
// kernel: _relu_convtranspose_bn_impl.1
= control target key start
LH: loop header
LB: loop body
LE: loop exit
PB: predicated region body
PF: predicated region fallthrough
CT: control target
= control target key end

     0   :  { %v444_v3 = vmov 0.0   ;;  %vm71_vm0 = vcmask 1043456   ;;  %vm58_vm1 = vcmask 293888   ;;  %s663_s0 = inlined_call_operand.vmem [shape: f32[36,512], index: 0, kind: input, shape index: {}]   ;;  %s664_s1 = inlined_call_operand.vmem [shape: f32[32,36], index: 1, kind: input, shape index: {}]   ;;  %s665_s2 = inlined_call_operand.vmem [shape: f32[2,8,1], index: 2, kind: input, shape index: {}]   ;;  %s666_s3 = inlined_call_operand.vmem [shape: f32[4,8,512], index: 3, kind: output, shape index: {}]  }
   0x1   :  { %v15_v0 = vld [vmem:[%s663_s0 + $0x8] sm:$0xff]  ;;  %v14_v2 = vld [vmem:[%s663_s0] sm:$0xff]  ;;  %148 = vmatprep.mubr.f32.mxu0 %v444_v3  ;;  %237 = vmatprep.mubr.f32.mxu1 %v444_v3  ;;  %v17_v8 = vld [vmem:[%s663_s0 + $0x18] sm:$0xff] }
   0x2   :  { %v19_v1 = vld [vmem:[%s663_s0 + $0x28] sm:$0xff]  ;;  %v35_v4 = vmax.f32 %v15_v0, 0.0  ;;  %v18_v6 = vld [vmem:[%s663_s0 + $0x20] sm:$0xff]  ;;  %v34_v7 = vmax.f32 %v14_v2, 0.0  ;;  %v21_v9 = vld [vmem:[%s663_s0 + $0x38] sm:$0xff]  ;;  %v37_v11 = vmax.f32 %v17_v8, 0.0 }
   0x3   :  { %v39_v5 = vmax.f32 %v19_v1, 0.0  ;;  %v38_v10 = vmax.f32 %v18_v6, 0.0  ;;  %v41_v12 = vmax.f32 %v21_v9, 0.0  ;;  %v16_v13 = vld [vmem:[%s663_s0 + $0x10] sm:$0xff]  ;;  %v23_v15 = vld [vmem:[%s663_s0 + $0x48] sm:$0xff]  ;;  %v22_v21 = vld [vmem:[%s663_s0 + $0x40] sm:$0xff] }
   0x4   :  { %v20_v14 = vld [vmem:[%s663_s0 + $0x30] sm:$0xff]  ;;  %v36_v17 = vmax.f32 %v16_v13, 0.0  ;;  %v27_v19 = vld [vmem:[%s663_s0 + $0x68] sm:$0xff]  ;;  %v43_v20 = vmax.f32 %v23_v15, 0.0  ;;  %v26_v22 = vld [vmem:[%s663_s0 + $0x60] sm:$0xff]  ;;  %v42_v26 = vmax.f32 %v22_v21, 0.0 }
   0x5   :  { %v422_v16 = vpack.c.bf16 %v39_v5, %v35_v4  ;;  %v40_v18 = vmax.f32 %v20_v14, 0.0  ;;  %v424_v23 = vpack.c.bf16 %v38_v10, %v34_v7  ;;  %v430_v24 = vpack.c.bf16 %v41_v12, %v37_v11  ;;  %v25_v27 = vld [vmem:[%s663_s0 + $0x58] sm:$0xff]  ;;  %v24_v29 = vld [vmem:[%s663_s0 + $0x50] sm:$0xff]  ;;  %v31_v35 = vld [vmem:[%s663_s0 + $0x88] sm:$0xf] }
   0x6   :  { %v47_v25 = vmax.f32 %v27_v19, 0.0  ;;  %v29_v28 = vld [vmem:[%s663_s0 + $0x78] sm:$0xff]  ;;  %v46_v31 = vmax.f32 %v26_v22, 0.0  ;;  %v45_v32 = vmax.f32 %v25_v27, 0.0  ;;  %v28_v34 = vld [vmem:[%s663_s0 + $0x70] sm:$0xff]  ;;  %v44_v37 = vmax.f32 %v24_v29, 0.0 }
   0x7   :  { %423 = vmatprep.subr.bf16.mxu0 %v422_v16  ;;  %v432_v30 = vpack.c.bf16 %v40_v18, %v36_v17  ;;  %v49_v33 = vmax.f32 %v29_v28, 0.0  ;;  %431 = vmatprep.subr.bf16.mxu1 %v430_v24  ;;  %v48_v38 = vmax.f32 %v28_v34, 0.0  ;;  %v51_v41 = vmax.f32 %v31_v35, 0.0  ;;  %v30_v42 = vld [vmem:[%s663_s0 + $0x80] sm:$0xf]  ;;  %v55_v50 = vld [vmem:[%s664_s1 + $0x8] sm:$0xff] }
   0x8   :  { %425 = vmatpush1.bf16.msra.mxu0 %v424_v23  ;;  %v426_v36 = vpack.c.bf16 %v47_v25, %v43_v20  ;;  %v428_v39 = vpack.c.bf16 %v46_v31, %v42_v26  ;;  %v33_v43 = vld [vmem:[%s663_s0 + $0x98] sm:$0xf]  ;;  %v32_v46 = vld [vmem:[%s663_s0 + $0x90] sm:$0xf]  ;;  %v50_v47 = vmax.f32 %v30_v42, 0.0  ;;  %v54_v49 = vld [vmem:[%s664_s1] sm:$0xff] }
   0x9   :  { %433 = vmatpush1.bf16.msra.mxu1 %v432_v30  ;;  %v434_v40 = vpack.c.bf16 %v49_v33, %v45_v32  ;;  %v436_v44 = vpack.c.bf16 %v48_v38, %v44_v37  ;;  %v53_v45 = vmax.f32 %v33_v43, 0.0  ;;  %v52_v48 = vmax.f32 %v32_v46, 0.0  ;;  %v56_v51 = vld [vmem:[%s664_s1 + $0x10] sm:$0xff]  ;;  %v57_v52 = vld [vmem:[%s664_s1 + $0x18] sm:$0xff] }
   0xa   :  { %427 = vmatprep.subr.bf16.mxu0 %v426_v36 }
   0xb   :  { %435 = vmatprep.subr.bf16.mxu1 %v434_v40 }
   0xc   :  { %429 = vmatpush1.bf16.msra.mxu0 %v428_v39 }
   0xd   :  { %437 = vmatpush1.bf16.msra.mxu1 %v436_v44  ;;  %410 = vmatprep.subr.msk.mxu0 %vm71_vm0, %v51_v41 }
   0xe   :  { %416 = vmatprep.subr.msk.mxu1 %vm71_vm0, %v53_v45 }
  0x10   :  { %411 = vmatpush1.msk.msra.mxu0 %vm71_vm0, %v50_v47 }
  0x11   :  { %412 = vmatmul.mubr.msk.f32.vlgmr.msra.gmra.mrb[0].mxu0 %vm58_vm1, %v54_v49  ;;  %417 = vmatpush1.msk.msra.mxu1 %vm71_vm0, %v52_v48 }
  0x12   :  { %418 = vmatmul.mubr.msk.f32.vlgmr.msra.gmra.mrb[0].mxu1 %vm58_vm1, %v54_v49  ;;  %154 = vmatprep.mubr.f32.mxu0 %v444_v3 }
  0x13   :  { %243 = vmatprep.mubr.f32.mxu1 %v444_v3 }
  0x15   :  { %413 = vmatmul.mubr.msk.f32.gmra.mrb[2].mxu0 %vm58_vm1, %v55_v50 }
  0x16   :  { %419 = vmatmul.mubr.msk.f32.gmra.mrb[2].mxu1 %vm58_vm1, %v55_v50  ;;  %160 = vmatprep.mubr.f32.mxu0 %v444_v3 }
  0x17   :  { %249 = vmatprep.mubr.f32.mxu1 %v444_v3 }
  0x19   :  { %414 = vmatmul.mubr.msk.f32.gmra.mrb[4].mxu0 %vm58_vm1, %v56_v51 }
  0x1a   :  { %420 = vmatmul.mubr.msk.f32.gmra.mrb[4].mxu1 %vm58_vm1, %v56_v51  ;;  %166 = vmatprep.mubr.f32.mxu0 %v444_v3 }
  0x1b   :  { %255 = vmatprep.mubr.f32.mxu1 %v444_v3 }
  0x1d   :  { %415 = vmatmul.mubr.msk.f32.gmra.mrb[6].mxu0 %vm58_vm1, %v57_v52 }
  0x1e   :  { %421 = vmatmul.mubr.msk.f32.gmra.mrb[6].mxu1 %vm58_vm1, %v57_v52 }
  0xe4   :  { %v150_v53 = vpop.f32.mrb[0].mxu0 }
  0xe5   :  { %v152_v54 = vpop.f32.mrb[1].mxu0  ;;  %v239_v55 = vpop.f32.mrb[0].mxu1 }
  0xe6   :  { %v262_v56 = vadd.f32 %v152_v54, %v150_v53  ;;  %v241_v57 = vpop.f32.mrb[1].mxu1 }
  0xe8   :  { %v263_v58 = vadd.f32 %v262_v56, %v239_v55  ;;  %v156_v59 = vpop.f32.mrb[2].mxu0 }
  0xe9   :  { %v158_v60 = vpop.f32.mrb[3].mxu0  ;;  %v245_v61 = vpop.f32.mrb[2].mxu1 }
  0xea   :  { %v267_v62 = vadd.f32 %v158_v60, %v156_v59  ;;  %v247_v63 = vpop.f32.mrb[3].mxu1  ;;  %v264_v0 = vadd.f32 %v263_v58, %v241_v57 }
  0xec   :  { %v268_v1 = vadd.f32 %v267_v62, %v245_v61  ;;  %265 = vadd.xlane.f32.xlu0 %v264_v0  ;;  %v162_v2 = vpop.f32.mrb[4].mxu0 }
  0xed   :  { %v164_v3 = vpop.f32.mrb[5].mxu0  ;;  %v251_v4 = vpop.f32.mrb[4].mxu1 }
  0xee   :  { %v272_v5 = vadd.f32 %v164_v3, %v162_v2  ;;  %v253_v6 = vpop.f32.mrb[5].mxu1  ;;  %v269_v7 = vadd.f32 %v268_v1, %v247_v63 }
  0xf0   :  { %v273_v8 = vadd.f32 %v272_v5, %v251_v4  ;;  %270 = vadd.xlane.f32.xlu0 %v269_v7  ;;  %v168_v9 = vpop.f32.mrb[6].mxu0  ;;  %v445_v7 = vmov 0  }
  0xf1   :  { %v170_v10 = vpop.f32.mrb[7].mxu0  ;;  %v257_v11 = vpop.f32.mrb[6].mxu1  ;;  %440 = vset.pattern.permute.xlu0 %v445_v7  ;;  %441 = vset.pattern.permute.xlu1 %v445_v7 }
  0xf2   :  { %v277_v12 = vadd.f32 %v170_v10, %v168_v9  ;;  %v259_v13 = vpop.f32.mrb[7].mxu1  ;;  %v274_v14 = vadd.f32 %v273_v8, %v253_v6 }
  0xf4   :  { %v278_v15 = vadd.f32 %v277_v12, %v257_v11  ;;  %275 = vadd.xlane.f32.xlu1 %v274_v14 }
  0xf6   :  { %v279_v16 = vadd.f32 %v278_v15, %v259_v13 }
  0xf8   :  { %280 = vadd.xlane.f32.xlu1 %v279_v16  ;;  %v343_v16 = vld [vmem:[%s665_s2] sm:$0xff] }
 0x179   :  { %v266_v17 = vpop.xlane.xlu0 %265 }
 0x17d   :  { %v271_v18 = vpop.xlane.xlu0 %270 }
 0x17e   :  { %v282_v20 = vadd.f32 %v271_v18, %v266_v17 }
 0x181   :  { %v276_v19 = vpop.xlane.xlu1 %275 }
 0x182   :  { %v283_v21 = vadd.f32 %v282_v20, %v276_v19 }
 0x185   :  { %v281_v22 = vpop.xlane.xlu1 %280 }
 0x186   :  { %v284_v23 = vadd.f32 %v283_v21, %v281_v22 }
 0x188   :  { %v285_v24 = vmul.f32 0.00048828125, %v284_v23 }
 0x18a   :  { %v554_v25 = vsub.f32 %v156_v59, %v285_v24  ;;  %v556_v26 = vsub.f32 %v158_v60, %v285_v24  ;;  %v558_v27 = vsub.f32 %v245_v61, %v285_v24  ;;  %v560_v28 = vsub.f32 %v247_v63, %v285_v24 }
 0x18b   :  { %v562_v29 = vsub.f32 %v150_v53, %v285_v24  ;;  %v564_v30 = vsub.f32 %v152_v54, %v285_v24  ;;  %v566_v31 = vsub.f32 %v239_v55, %v285_v24  ;;  %v568_v32 = vsub.f32 %v241_v57, %v285_v24 }
 0x18c   :  { %v304_v33 = vmul.f32 %v554_v25, %v554_v25  ;;  %v305_v34 = vmul.f32 %v556_v26, %v556_v26  ;;  %v306_v35 = vmul.f32 %v558_v27, %v558_v27  ;;  %v307_v36 = vmul.f32 %v560_v28, %v560_v28 }
 0x18d   :  { %v290_v37 = vmul.f32 %v562_v29, %v562_v29  ;;  %v291_v38 = vmul.f32 %v564_v30, %v564_v30  ;;  %v292_v39 = vmul.f32 %v566_v31, %v566_v31  ;;  %v584_v41 = vsub.f32 %v168_v9, %v285_v24 }
 0x18e   :  { %v308_v40 = vadd.f32 %v305_v34, %v304_v33  ;;  %v586_v42 = vsub.f32 %v170_v10, %v285_v24  ;;  %v588_v43 = vsub.f32 %v257_v11, %v285_v24  ;;  %v293_v44 = vmul.f32 %v568_v32, %v568_v32 }
 0x18f   :  { %v294_v45 = vadd.f32 %v291_v38, %v290_v37  ;;  %v314_v46 = vsub.f32 %v162_v2, %v285_v24  ;;  %v315_v47 = vsub.f32 %v164_v3, %v285_v24  ;;  %v331_v49 = vsub.f32 %v259_v13, %v285_v24 }
 0x190   :  { %v309_v48 = vadd.f32 %v308_v40, %v306_v35  ;;  %v332_v50 = vmul.f32 %v584_v41, %v584_v41  ;;  %v333_v51 = vmul.f32 %v586_v42, %v586_v42  ;;  %v334_v53 = vmul.f32 %v588_v43, %v588_v43 }
 0x191   :  { %v295_v52 = vadd.f32 %v294_v45, %v292_v39  ;;  %v316_v54 = vsub.f32 %v251_v4, %v285_v24  ;;  %v317_v55 = vsub.f32 %v253_v6, %v285_v24  ;;  %v318_v58 = vmul.f32 %v314_v46, %v314_v46  ;;  %v344_v4 = vld [vmem:[%s665_s2 + $0x8] sm:$0xff] }
 0x192   :  { %v310_v56 = vadd.f32 %v309_v48, %v307_v36  ;;  %v336_v57 = vadd.f32 %v333_v51, %v332_v50  ;;  %v319_v59 = vmul.f32 %v315_v47, %v315_v47  ;;  %v335_v61 = vmul.f32 %v331_v49, %v331_v49 }
 0x193   :  { %v296_v60 = vadd.f32 %v295_v52, %v293_v44  ;;  %v320_v63 = vmul.f32 %v316_v54, %v316_v54  ;;  %v321_v2 = vmul.f32 %v317_v55, %v317_v55 }
 0x194   :  { %311 = vadd.xlane.f32.xlu1 %v310_v56  ;;  %v337_v62 = vadd.f32 %v336_v57, %v334_v53  ;;  %v322_v0 = vadd.f32 %v319_v59, %v318_v58 }
 0x195   :  { %297 = vadd.xlane.f32.xlu0 %v296_v60 }
 0x196   :  { %v338_v1 = vadd.f32 %v337_v62, %v335_v61  ;;  %v323_v3 = vadd.f32 %v322_v0, %v320_v63 }
 0x198   :  { %339 = vadd.xlane.f32.xlu1 %v338_v1  ;;  %v324_v5 = vadd.f32 %v323_v3, %v321_v2 }
 0x19a   :  { %325 = vadd.xlane.f32.xlu0 %v324_v5 }
 0x1a9   :  { %371 = vperm.xlu1 %441, %v344_v4  }
 0x221   :  { %v312_v8 = vpop.xlane.xlu1 %311 }
 0x222   :  { %v298_v6 = vpop.xlane.xlu0 %297 }
 0x223   :  { %v313_v9 = vadd.f32 %v312_v8, %v298_v6 }
 0x225   :  { %v340_v12 = vpop.xlane.xlu1 %339 }
 0x227   :  { %v326_v10 = vpop.xlane.xlu0 %325 }
 0x228   :  { %v327_v11 = vadd.f32 %v326_v10, %v313_v9 }
 0x229   :  { %v372_v36 = vpop.permute.xlu1 %371 }
 0x22a   :  { %v341_v13 = vadd.f32 %v340_v12, %v327_v11 }
 0x22c   :  { %v342_v14 = vmul.f32 0.00048828125, %v341_v13 }
 0x22e   :  { %v345_v15 = vadd.f32 1e-05, %v342_v14 }
 0x230   :  { %442 = vrsqrt.f32 %v345_v15 }
 0x23a   :  { %v443_v17 = vpop.eup %442 }
 0x23b   :  { %v347_v18 = vmul.f32 %v443_v17, %v343_v16 }
 0x23d   :  { %350 = vperm.xlu0 %440, %v347_v18  }
 0x2bc   :  { %v351_v19 = vpop.permute.xlu0 %350 }
 0x2bd   :  { %v353_v20 = vmul.f32 %v351_v19, %v562_v29  ;;  %v354_v21 = vmul.f32 %v351_v19, %v564_v30  ;;  %v355_v22 = vmul.f32 %v351_v19, %v566_v31  ;;  %v356_v23 = vmul.f32 %v351_v19, %v568_v32 }
 0x2be   :  { %v357_v24 = vmul.f32 %v351_v19, %v554_v25  ;;  %v358_v33 = vmul.f32 %v351_v19, %v556_v26  ;;  %v359_v34 = vmul.f32 %v351_v19, %v558_v27  ;;  %v360_v35 = vmul.f32 %v351_v19, %v560_v28 }
 0x2bf   :  { %v361_v37 = vmul.f32 %v351_v19, %v314_v46  ;;  %v362_v38 = vmul.f32 %v351_v19, %v315_v47  ;;  %v363_v39 = vmul.f32 %v351_v19, %v316_v54  ;;  %v364_v40 = vmul.f32 %v351_v19, %v317_v55 }
 0x2c0   :  { %v365_v29 = vmul.f32 %v351_v19, %v584_v41  ;;  %v366_v30 = vmul.f32 %v351_v19, %v586_v42  ;;  %v367_v31 = vmul.f32 %v351_v19, %v588_v43  ;;  %v368_v32 = vmul.f32 %v351_v19, %v331_v49 }
 0x2c1   :  { %v374_v44 = vadd.f32 %v372_v36, %v353_v20  ;;  %v375_v25 = vadd.f32 %v372_v36, %v354_v21  ;;  %v376_v45 = vadd.f32 %v372_v36, %v355_v22  ;;  %v377_v26 = vadd.f32 %v372_v36, %v356_v23 }
 0x2c2   :  { %v378_v48 = vadd.f32 %v372_v36, %v357_v24  ;;  %v379_v27 = vadd.f32 %v372_v36, %v358_v33  ;;  %v380_v50 = vadd.f32 %v372_v36, %v359_v34  ;;  %v381_v28 = vadd.f32 %v372_v36, %v360_v35 }
 0x2c3   :  { %v382_v51 = vadd.f32 %v372_v36, %v361_v37  ;;  %v383_v46 = vadd.f32 %v372_v36, %v362_v38  ;;  %v384_v47 = vadd.f32 %v372_v36, %v363_v39  ;;  %v385_v52 = vadd.f32 %v372_v36, %v364_v40  ;;  %390 = vst [vmem:[%s666_s3] sm:$0xff] %v374_v44 }
 0x2c4   :  { %391 = vst [vmem:[%s666_s3 + $0x8] sm:$0xff] %v375_v25  ;;  %392 = vst [vmem:[%s666_s3 + $0x10] sm:$0xff] %v376_v45  ;;  %v386_v41 = vadd.f32 %v372_v36, %v365_v29  ;;  %v387_v42 = vadd.f32 %v372_v36, %v366_v30  ;;  %v388_v43 = vadd.f32 %v372_v36, %v367_v31 }
 0x2c5   :  { %393 = vst [vmem:[%s666_s3 + $0x18] sm:$0xff] %v377_v26  ;;  %v389_v49 = vadd.f32 %v372_v36, %v368_v32  ;;  %394 = vst [vmem:[%s666_s3 + $0x20] sm:$0xff] %v378_v48 }
 0x2c6   :  { %395 = vst [vmem:[%s666_s3 + $0x28] sm:$0xff] %v379_v27  ;;  %396 = vst [vmem:[%s666_s3 + $0x30] sm:$0xff] %v380_v50 }
 0x2c7   :  { %397 = vst [vmem:[%s666_s3 + $0x38] sm:$0xff] %v381_v28  ;;  %398 = vst [vmem:[%s666_s3 + $0x40] sm:$0xff] %v382_v51 }
 0x2c8   :  { %399 = vst [vmem:[%s666_s3 + $0x48] sm:$0xff] %v383_v46  ;;  %400 = vst [vmem:[%s666_s3 + $0x50] sm:$0xff] %v384_v47 }
 0x2c9   :  { %401 = vst [vmem:[%s666_s3 + $0x58] sm:$0xff] %v385_v52  ;;  %402 = vst [vmem:[%s666_s3 + $0x60] sm:$0xff] %v386_v41 }
 0x2ca   :  { %403 = vst [vmem:[%s666_s3 + $0x68] sm:$0xff] %v387_v42  ;;  %404 = vst [vmem:[%s666_s3 + $0x70] sm:$0xff] %v388_v43 }
 0x2cb   :  { %405 = vst [vmem:[%s666_s3 + $0x78] sm:$0xff] %v389_v49 }

</bundles_post_ra>
